<compile_context>
chip_gen: v5e
topology: v5e:2x2
jax: 0.10.0
libtpu: 0.0.40
codegen_flags: <defaults>
</compile_context>

<pallas_src>
import functools
import math

import jax
import jax.numpy as jnp
import numpy as np
from jax.experimental import pallas as pl
from jax.experimental.pallas import tpu as pltpu

BN_EPS = 1e-5


# ---------------------------------------------------------------------------
# Pallas kernel: fused  fc -> BN shift -> GLU gate  on one batch tile
# ---------------------------------------------------------------------------
def _glu_layer_kernel(x_ref, wv_ref, wg_ref, shift_ref, o_ref):
    x = x_ref[...]
    # BN scale is already folded into wv/wg host-side; only the shift remains.
    v = jnp.dot(x, wv_ref[...], preferred_element_type=jnp.float32) + shift_ref[0:1, :]
    g = jnp.dot(x, wg_ref[...], preferred_element_type=jnp.float32) + shift_ref[1:2, :]
    o_ref[...] = (v * jax.nn.sigmoid(g)).astype(o_ref.dtype)


# ---------------------------------------------------------------------------
# Wrapper: host-side BN fold + weight split, then one pallas_call
# ---------------------------------------------------------------------------
def glu_layer_apply(x, w, bn_gamma, bn_beta, bn_mean, bn_var, *,
                    out_dim, eps=BN_EPS, block_b=512):
    """x: (B, in_dim) f32.  w: (in_dim, 2*out_dim) f32 (torch fc.weight transposed)."""
    B, in_dim = x.shape

    # Eval-mode (Ghost)BatchNorm1d folded into an affine:  y = h * scale + shift
    scale = bn_gamma / jnp.sqrt(bn_var + eps)              # (2*out_dim,)
    shift = bn_beta - bn_mean * scale                      # (2*out_dim,)

    w_scaled = w * scale[None, :]                          # fold BN scale into fc
    wv = w_scaled[:, :out_dim]                             # value half (in, out)
    wg = w_scaled[:, out_dim:]                             # gate  half (in, out)
    shifts = jnp.stack([shift[:out_dim], shift[out_dim:]], axis=0)  # (2, out_dim)

    # Batch tile: whole batch if it fits, else a multiple-of-8 tile.
    if B <= block_b:
        tb = B
    else:
        assert block_b % 8 == 0, "block_b must be a multiple of 8 (sublane tiling)"
        tb = block_b
    grid = (pl.cdiv(B, tb),)

    return pl.pallas_call(
        _glu_layer_kernel,
        out_shape=jax.ShapeDtypeStruct((B, out_dim), jnp.float32),
        grid=grid,
        in_specs=[
            pl.BlockSpec((tb, in_dim), lambda i: (i, 0)),          # x tile
            pl.BlockSpec((in_dim, out_dim), lambda i: (0, 0)),     # Wv (resident)
            pl.BlockSpec((in_dim, out_dim), lambda i: (0, 0)),     # Wg (resident)
            pl.BlockSpec((2, out_dim), lambda i: (0, 0)),          # BN shifts (resident)
        ],
        out_specs=pl.BlockSpec((tb, out_dim), lambda i: (i, 0)),
        compiler_params=pltpu.CompilerParams(
            dimension_semantics=("parallel",),
        ),
    )(x, wv, wg, shifts)


# ---------------------------------------------------------------------------
# Parameter init matching the PyTorch module (initialize_glu / GhostBatchNorm)
# ---------------------------------------------------------------------------
def init_glu_layer_params(key, input_dim, output_dim):
    # torch: nn.Linear(input_dim, 2*output_dim, bias=False), xavier_normal_
    # with gain = sqrt((input_dim + 2*output_dim) / sqrt(input_dim)).
    fan_in, fan_out = input_dim, 2 * output_dim
    gain = math.sqrt((input_dim + 2 * output_dim) / math.sqrt(input_dim))
    std = gain * math.sqrt(2.0 / (fan_in + fan_out))
    # stored transposed (in_dim, 2*out_dim) so the kernel computes x @ W directly
    w = std * jax.random.normal(key, (input_dim, 2 * output_dim), jnp.float32)
    # GhostBatchNorm defaults (freshly constructed, eval mode)
    bn_gamma = jnp.ones((2 * output_dim,), jnp.float32)
    bn_beta = jnp.zeros((2 * output_dim,), jnp.float32)
    bn_mean = jnp.zeros((2 * output_dim,), jnp.float32)
    bn_var = jnp.ones((2 * output_dim,), jnp.float32)
    return w, bn_gamma, bn_beta, bn_mean, bn_var


def glu_layer_reference(x, w, bn_gamma, bn_beta, bn_mean, bn_var, *, out_dim,
                        eps=BN_EPS):
    h = x @ w
    h = (h - bn_mean) / jnp.sqrt(bn_var + eps) * bn_gamma + bn_beta
    return h[:, :out_dim] * jax.nn.sigmoid(h[:, out_dim:])


# ---------------------------------------------------------------------------
if __name__ == "__main__":
    # Small config consistent with TabNet usage of GLU_Layer.
    input_dim = 16          # n_d + n_a feature width
    output_dim = 16
    virtual_batch_size = 8  # (BN runs in eval mode; see TODO above)
    momentum = 0.02
    B = 32
    block_b = 8             # batch tile -> 1-D grid of 4 pipelined steps

    key = jax.random.PRNGKey(0)
    kx, kw = jax.random.split(key)
    x = jax.random.normal(kx, (B, input_dim), jnp.float32)
    w, bn_gamma, bn_beta, bn_mean, bn_var = init_glu_layer_params(
        kw, input_dim, output_dim)

    run = jax.jit(functools.partial(glu_layer_apply, out_dim=output_dim,
                                    block_b=block_b))
    out = run(x, w, bn_gamma, bn_beta, bn_mean, bn_var)
    jax.block_until_ready(out)

    ref = glu_layer_reference(x, w, bn_gamma, bn_beta, bn_mean, bn_var,
                              out_dim=output_dim)
    assert out.shape == (B, output_dim)
    np.testing.assert_allclose(np.asarray(out), np.asarray(ref),
                               rtol=1e-5, atol=1e-5)
    assert np.all(np.isfinite(np.asarray(out)))
    print("KERNEL_OK")
</pallas_src>

<mosaic_0001>
module attributes {stable_mosaic.version = 11 : i64} {
  func.func @_glu_layer_kernel(%arg0: i32, %arg1: memref<8x16xf32, #tpu.memory_space<vmem>>, %arg2: memref<16x16xf32, #tpu.memory_space<vmem>>, %arg3: memref<16x16xf32, #tpu.memory_space<vmem>>, %arg4: memref<2x16xf32, #tpu.memory_space<vmem>>, %arg5: memref<8x16xf32, #tpu.memory_space<vmem>>) attributes {dimension_semantics = [#tpu.dimension_semantics<parallel>], iteration_bounds = array<i64: 4>, scalar_prefetch = 0 : i64, scratch_operands = 0 : i64, tpu.core_type = #tpu.core_type<tc>, window_params = [{transform_indices = @transform_0, window_bounds = array<i64: 8, 16>}, {pipeline_mode = #tpu.pipeline_mode<synchronous>, transform_indices = @transform_1, window_bounds = array<i64: 16, 16>}, {pipeline_mode = #tpu.pipeline_mode<synchronous>, transform_indices = @transform_2, window_bounds = array<i64: 16, 16>}, {pipeline_mode = #tpu.pipeline_mode<synchronous>, transform_indices = @transform_3, window_bounds = array<i64: 2, 16>}, {transform_indices = @transform_4, window_bounds = array<i64: 8, 16>}]} {
    %c0 = arith.constant 0 : index
    %c0_0 = arith.constant 0 : index
    %0 = vector.load %arg1[%c0, %c0_0] : memref<8x16xf32, #tpu.memory_space<vmem>>, vector<8x16xf32>
    %c0_1 = arith.constant 0 : index
    %c0_2 = arith.constant 0 : index
    %1 = vector.load %arg2[%c0_1, %c0_2] : memref<16x16xf32, #tpu.memory_space<vmem>>, vector<16x16xf32>
    %cst = arith.constant dense<0.000000e+00> : vector<8x16xf32>
    %2 = tpu.matmul %0, %1, %cst {dimension_numbers = #tpu.dot_dimension_numbers<[1], [0], [0], [1], [0, 0, 1, 1], [], []>} : vector<8x16xf32>, vector<16x16xf32>, vector<8x16xf32> -> vector<8x16xf32>
    %c0_3 = arith.constant 0 : index
    %c0_4 = arith.constant 0 : index
    %3 = vector.load %arg4[%c0_3, %c0_4] : memref<2x16xf32, #tpu.memory_space<vmem>>, vector<1x16xf32>
    %4 = vector.broadcast %3 : vector<1x16xf32> to vector<8x16xf32>
    %5 = arith.addf %2, %4 : vector<8x16xf32>
    %c0_5 = arith.constant 0 : index
    %c0_6 = arith.constant 0 : index
    %6 = vector.load %arg3[%c0_5, %c0_6] : memref<16x16xf32, #tpu.memory_space<vmem>>, vector<16x16xf32>
    %cst_7 = arith.constant dense<0.000000e+00> : vector<8x16xf32>
    %7 = tpu.matmul %0, %6, %cst_7 {dimension_numbers = #tpu.dot_dimension_numbers<[1], [0], [0], [1], [0, 0, 1, 1], [], []>} : vector<8x16xf32>, vector<16x16xf32>, vector<8x16xf32> -> vector<8x16xf32>
    %c1 = arith.constant 1 : index
    %c0_8 = arith.constant 0 : index
    %8 = vector.load %arg4[%c1, %c0_8] : memref<2x16xf32, #tpu.memory_space<vmem>>, vector<1x16xf32>
    %9 = vector.broadcast %8 : vector<1x16xf32> to vector<8x16xf32>
    %10 = arith.addf %7, %9 : vector<8x16xf32>
    %11 = arith.negf %10 : vector<8x16xf32>
    %12 = math.exp %11 : vector<8x16xf32>
    %cst_9 = arith.constant 1.000000e+00 : f32
    %13 = vector.broadcast %cst_9 : f32 to vector<8x16xf32>
    %14 = arith.addf %13, %12 : vector<8x16xf32>
    %15 = arith.divf %13, %14 : vector<8x16xf32>
    %16 = arith.mulf %5, %15 : vector<8x16xf32>
    %c0_10 = arith.constant 0 : index
    %c0_11 = arith.constant 0 : index
    %17 = vector.load %arg5[%c0_10, %c0_11] : memref<8x16xf32, #tpu.memory_space<vmem>>, vector<8x16xf32>
    tpu.vector_store %arg5[%c0_10, %c0_11], %16 {strides = array<i32>} : memref<8x16xf32, #tpu.memory_space<vmem>>, vector<8x16xf32>,
    return
  }
  func.func @transform_0(%arg0: i32) -> (i32, i32) {
    %c0_i32 = arith.constant 0 : i32
    %c0_i32_0 = arith.constant 0 : i32
    return %arg0, %c0_i32 : i32, i32
  }
  func.func @transform_1(%arg0: i32) -> (i32, i32) {
    %c0_i32 = arith.constant 0 : i32
    %c0_i32_0 = arith.constant 0 : i32
    %c0_i32_1 = arith.constant 0 : i32
    return %c0_i32, %c0_i32_0 : i32, i32
  }
  func.func @transform_2(%arg0: i32) -> (i32, i32) {
    %c0_i32 = arith.constant 0 : i32
    %c0_i32_0 = arith.constant 0 : i32
    %c0_i32_1 = arith.constant 0 : i32
    return %c0_i32, %c0_i32_0 : i32, i32
  }
  func.func @transform_3(%arg0: i32) -> (i32, i32) {
    %c0_i32 = arith.constant 0 : i32
    %c0_i32_0 = arith.constant 0 : i32
    %c0_i32_1 = arith.constant 0 : i32
    return %c0_i32, %c0_i32_0 : i32, i32
  }
  func.func @transform_4(%arg0: i32) -> (i32, i32) {
    %c0_i32 = arith.constant 0 : i32
    %c0_i32_0 = arith.constant 0 : i32
    return %arg0, %c0_i32 : i32, i32
  }
}

</mosaic_0001>

<bundles_post_ra>
// kernel: glu_layer_apply.1
= control target key start
LH: loop header
LB: loop body
LE: loop exit
PB: predicated region body
PF: predicated region fallthrough
CT: control target
= control target key end

     0   :  { %s379_s15 = smov 0   ;;  %s424_s0 = inlined_call_operand.vmem [shape: f32[32,16], index: 0, kind: input, shape index: {}]   ;;  %s425_s1 = inlined_call_operand.vmem [shape: f32[16,16], index: 1, kind: input, shape index: {}]   ;;  %s426_s2 = inlined_call_operand.vmem [shape: f32[16,16], index: 2, kind: input, shape index: {}]   ;;  %s427_s3 = inlined_call_operand.vmem [shape: f32[2,16], index: 3, kind: input, shape index: {}]   ;;  %s428_s4 = inlined_call_operand.vmem [shape: f32[32,16], index: 4, kind: output, shape index: {}]  }
   0x1 LB: > { %s320_s16 = sadd.s32 4294967295, %s352_s15   ;;  %p324_p0 = scmp.ge.s32.totalorder %s352_s15, 1  ;;  %s352_s15 = sphi %s379_s15, %s14_s15  }
   0x2   : > { %p161_p1 = scmp.lt.s32.totalorder %s352_s15, 5 }
   0x4   : > { %p162_p2 = pnand %p324_p0, %p161_p1 }
   0x5   : > { %p185_p3 = scmp.lt.s32.totalorder (!%p162_p2), %s320_s16, 3 }
   0x6   : > { %165 = sbr.rel (%p162_p2) target bundleno = 174 (0xae), region = 36 }
   0xb   : > { %v223_v0 = vld [vmem:[%s426_s2 + $0x8] sm:$0xff]  ;;  %v222_v1 = vld [vmem:[%s426_s2] sm:$0xff]  ;;  %s430_s16 = smov (!%p185_p3, %s320_s16), 3  ;;  %vm198_vm0 = vcmask 130048  }
   0xc   : > { %v195_v2 = vld [vmem:[%s425_s1 + $0x8] sm:$0xff]  ;;  %240 = vmatpush.msra.mxu1 %v223_v0  ;;  %v194_v3 = vld [vmem:[%s425_s1] sm:$0xff]  ;;  %s325_s25 = sshll.u32 %s430_s16, 3 }
   0xd   : > { %216 = vmatpush.msra.mxu0 %v195_v2  ;;  %s188_s28 = scalar_lea.vmem %s424_s0, %s325_s25  ;;  %v340_v5 = vld [vmem:[%s427_s3 + $0x1] ss:$0 sm:$0xff]  ;;  %v341_v13 = vld [vmem:[%s427_s3] ss:$0 sm:$0xff]  ;;  %s192_s9 = scalar_lea.vmem %s428_s4, %s325_s25 }
   0xe   : > { %241 = vmatpush.msra.mxu1 %v222_v1  ;;  %v193_v4 = vld [vmem:[%s188_s28] sm:$0xff] }
   0xf   : > { %217 = vmatpush.msra.mxu0 %v194_v3  ;;  %328 = vmatmul.msk.f32.vlgmr.msra.gmra.mxu1 %vm198_vm0, %v193_v4 }
  0x10   : > { %327 = vmatmul.msk.f32.vlgmr.msra.gmra.mxu0 %vm198_vm0, %v193_v4 }
  0x8c   : > { %v243_v6 = vpop.f32.mrf.mxu1 }
  0x8d   : > { %v244_v7 = vadd.f32 %v340_v5, %v243_v6  ;;  %v219_v15 = vpop.f32.mrf.mxu0 }
  0x8e   : > { %v220_v19 = vadd.f32 %v341_v13, %v219_v15 }
  0x8f   : > { %v329_v8 = vmul.f32 -1.442695, %v244_v7 }
  0x91   : > { %342 = vpow2.f32 %v329_v8 }
  0x97   : > { %v343_v9 = vpop.eup %342 }
  0x98   : > { %v249_v10 = vadd.f32 1.0, %v343_v9 }
  0x9a   : > { %344 = vrcp.f32 %v249_v10  ;;  %v261_v16 = vand.u32 2147483648, %v249_v10  ;;  %v259_v18 = vand.u32 2147483647, %v249_v10  ;;  %vm255_vm2 = vweird.f32 %v249_v10 }
  0x9c   : > { %v262_v21 = vor.u32 1.1754944e-38, %v261_v16  ;;  %vm260_vm4 = vcmp.eq.f32.partialorder %v259_v18, 8.507059e+37 }
  0xa0   : > { %v345_v11 = vpop.eup %344 }
  0xa1   : > { %v251_v12 = vmul.f32 %v345_v11, %v249_v10  ;;  %vm256_vm1 = vweird.f32 %v345_v11 }
  0xa2   : > { %vm257_vm3 = vmor %vm255_vm2, %vm256_vm1 }
  0xa3   : > { %v252_v14 = vsub.f32 1.0, %v251_v12 }
  0xa5   : > { %v253_v17 = vmul.f32 %v345_v11, %v252_v14 }
  0xa7   : > { %v254_v20 = vadd.f32 %v345_v11, %v253_v17 }
  0xa9   : > { %v258_v22 = vsel %vm257_vm3, %v345_v11, %v254_v20 }
  0xaa   : > { %v263_v23 = vsel %vm260_vm4, %v262_v21, %v258_v22 }
  0xab   : > { %v265_v24 = vmul.f32 %v263_v23, %v220_v19 }
  0xad   : > { %266 = vst.msk [vmem:[%s192_s9] sm:$0xff] %vm198_vm0, %v265_v24 }
  0xae PF: > { %s14_s15 = sadd.s32 1, %s352_s15  }
  0xaf   : > { %p11_p4 = scmp.ge.s32.totalorder %s14_s15, 6  }
  0xb1   :  { %13 = sbr.rel (!%p11_p4) target bundleno = 1 (0x1), region = 66 }

</bundles_post_ra>
